<compile_context>
chip_gen: v7x
topology: tpu7x:2x2x1
jax: 0.10.0
libtpu: 0.0.40
codegen_flags: <defaults>
</compile_context>

<pallas_src>
import jax
import jax.numpy as jnp
from jax.experimental import pallas as pl
from jax.experimental.pallas import tpu as pltpu


_TILE_T_MAX = 2048     # max rows per grid step (fits all generations' VMEM)
_MIN_SPLIT_T = 512     # if T >= this, force >= 2 grid steps (v7x megacore)
_PALLAS_MIN_T = 256    # below this, XLA's fused dot-relu-dot wins on overhead


def _round_up(x, m):
    return ((x + m - 1) // m) * m


def _audio_proj_kernel(x_ref, w1_ref, b1_ref, w2_ref, b2_ref, o_ref):
    # x_ref : (tile_t, 128) f32   w1_ref: (128, 512) bf16   b1_ref: (1, 512) f32
    # w2_ref: (512, 256)   bf16   b2_ref: (1, 256)   f32    o_ref : (tile_t, 256)
    x = x_ref[...].astype(jnp.bfloat16)
    h = jnp.dot(x, w1_ref[...], preferred_element_type=jnp.float32)
    h = jnp.maximum(h + b1_ref[...], 0.0)                      # bias + ReLU on VPU (f32)
    y = jnp.dot(h.astype(jnp.bfloat16), w2_ref[...],
                preferred_element_type=jnp.float32)
    o_ref[...] = (y + b2_ref[...]).astype(o_ref.dtype)         # bias add in f32, then cast


def _audio_proj_xla(x, w1, b1, w2, b2, out_dtype=jnp.float32):
    # Fused XLA path (also serves as the pure-JAX reference). Same
    # bf16-input / f32-accumulate recipe as the kernel.
    h = jnp.dot(x.astype(jnp.bfloat16), w1, preferred_element_type=jnp.float32) + b1
    h = jnp.maximum(h, 0.0)
    y = jnp.dot(h.astype(jnp.bfloat16), w2, preferred_element_type=jnp.float32) + b2
    return y.astype(out_dtype)


def audio_proj_pallas(feat_aud, w1, b1, w2, b2, *,
                      out_dtype=jnp.float32, min_pallas_rows=_PALLAS_MIN_T):
    """Fused Linear(128->512) + ReLU + Linear(512->256).

    feat_aud: (T, 128) float32. w1/w2 are bf16, b1/b2 are f32 with a leading
    singleton dim. Returns (T, 256) in `out_dtype` (default float32).
    """
    T, Din = feat_aud.shape
    Dh = w1.shape[1]
    Dout = w2.shape[1]

    # Tiny-T dispatch: launch overhead dominates below ~256 rows.
    if T < min_pallas_rows:
        return _audio_proj_xla(feat_aud, w1, b1, w2, b2, out_dtype)

    # Evenly split row tiles (multiple of 8 = f32 sublane granularity),
    # forcing >= 2 grid steps for medium/large T so both v7x TCs get work.
    n_tiles = max(pl.cdiv(T, _TILE_T_MAX), 2 if T >= _MIN_SPLIT_T else 1)
    tile_t = min(_round_up(pl.cdiv(T, n_tiles), 8), _TILE_T_MAX)
    grid = (pl.cdiv(T, tile_t),)

    out_bytes = jnp.dtype(out_dtype).itemsize
    flops = 2 * T * (Din * Dh + Dh * Dout)
    bytes_accessed = int(
        T * Din * 4                                   # x read (f32)
        + T * Dout * out_bytes                        # out write
        + (Din * Dh + Dh * Dout) * 2                  # bf16 weights
        + (Dh + Dout) * 4                             # f32 biases
    )

    out = pl.pallas_call(
        _audio_proj_kernel,
        out_shape=jax.ShapeDtypeStruct((T, Dout), out_dtype),
        grid=grid,
        in_specs=[
            pl.BlockSpec((tile_t, Din), lambda i: (i, 0)),   # x: streamed over T
            pl.BlockSpec((Din, Dh), lambda i: (0, 0)),       # w1: VMEM-resident
            pl.BlockSpec((1, Dh), lambda i: (0, 0)),         # b1: VMEM-resident
            pl.BlockSpec((Dh, Dout), lambda i: (0, 0)),      # w2: VMEM-resident
            pl.BlockSpec((1, Dout), lambda i: (0, 0)),       # b2: VMEM-resident
        ],
        out_specs=pl.BlockSpec((tile_t, Dout), lambda i: (i, 0)),
        compiler_params=pltpu.CompilerParams(
            dimension_semantics=("parallel",),               # megacore on v7x
        ),
        cost_estimate=pl.CostEstimate(
            flops=flops, transcendentals=0, bytes_accessed=bytes_accessed),
    )(feat_aud, w1, b1, w2, b2)
    return out


class AdaptiveAVSPallas:
    """JAX/Pallas analogue of AdaptiveAVS.

    Only the audio_proj branch is computed via Pallas; the Mask2Former
    forward / loss / binary-segmentation post-processing are external
    pretrained components with no Pallas equivalent.
    """

    def __init__(self, key):
        k1, k2, k3, k4 = jax.random.split(key, 4)
        # nn.Linear-style init; weights stored in bf16 for the MXU fast path.
        self.w1 = (jax.random.normal(k1, (128, 512), jnp.float32)
                   * (1.0 / 128.0 ** 0.5)).astype(jnp.bfloat16)
        self.b1 = jax.random.normal(k2, (1, 512), jnp.float32) * 0.01
        self.w2 = (jax.random.normal(k3, (512, 256), jnp.float32)
                   * (1.0 / 512.0 ** 0.5)).astype(jnp.bfloat16)
        self.b2 = jax.random.normal(k4, (1, 256), jnp.float32) * 0.01

    def forward(self, batch_data):
        # audio_emb = feat_aud.view(1, -1, 128) -> audio_proj
        feat_aud = batch_data["feat_aud"].reshape(-1, 128)
        audio_emb = audio_proj_pallas(feat_aud, self.w1, self.b1, self.w2, self.b2)
        audio_emb = audio_emb.reshape(1, -1, 256)  # prompt_features_projected

        # TODO(synk): Mask2FormerForUniversalSegmentation forward (pretrained swin
        # backbone + mask decoder), get_loss, and
        # image_processor.post_process_binary_segmentation have no Pallas
        # equivalent; only pass-through of the prepared inputs is done here.
        pixel_values = batch_data["pixel_values"].reshape(-1, 3, 16, 16)  # NCHW (downsized 384->16 for the synthetic run)
        pixel_mask = batch_data["pixel_mask"].reshape(-1, 16, 16)
        del pixel_values  # consumed only by the (absent) Mask2Former forward

        # Surrogate "loss_frame"/"logits" so the forward returns the same
        # structure ([loss], logits) without faking the Mask2Former math.
        loss_frame = jnp.mean(audio_emb.astype(jnp.float32) ** 2)
        logits = pixel_mask.astype(jnp.float32)
        return ([loss_frame], logits)


if __name__ == "__main__":
    key = jax.random.PRNGKey(0)
    k_model, k_aud, k_img, k_big, k_huge = jax.random.split(key, 5)

    model = AdaptiveAVSPallas(k_model)

    # Small synthetic batch consistent with the forward's expected fields.
    T = 8  # number of audio frames
    batch_data = {
        "feat_aud": jax.random.normal(k_aud, (1, T, 128), jnp.float32),
        "pixel_values": jax.random.normal(k_img, (T, 3, 16, 16), jnp.float32),
        "pixel_mask": jnp.ones((T, 16, 16), jnp.float32),
        "mask_recs": [None] * T,
        "image_size": [(16, 16)],
    }

    (losses, logits) = model.forward(batch_data)
    jax.block_until_ready(losses[0])
    jax.block_until_ready(logits)

    # 1) Small T, Pallas forced (bypass the tiny-T XLA dispatch) vs reference.
    x = batch_data["feat_aud"].reshape(-1, 128)
    got = audio_proj_pallas(x, model.w1, model.b1, model.w2, model.b2,
                            min_pallas_rows=0)
    want = _audio_proj_xla(x, model.w1, model.b1, model.w2, model.b2)
    jax.block_until_ready(got)
    assert got.shape == (T, 256)
    assert jnp.allclose(got, want, atol=1e-2, rtol=1e-2)

    # 2) T=520: even split -> two balanced 264-row tiles, partial last tile.
    T2 = 520
    x2 = jax.random.normal(k_big, (T2, 128), jnp.float32)
    got2 = audio_proj_pallas(x2, model.w1, model.b1, model.w2, model.b2)
    want2 = _audio_proj_xla(x2, model.w1, model.b1, model.w2, model.b2)
    jax.block_until_ready(got2)
    assert got2.shape == (T2, 256)
    assert jnp.allclose(got2, want2, atol=1e-2, rtol=1e-2)

    # 3) bf16 output path (halves the dominant HBM write stream on v6e).
    got2b = audio_proj_pallas(x2, model.w1, model.b1, model.w2, model.b2,
                              out_dtype=jnp.bfloat16)
    jax.block_until_ready(got2b)
    assert got2b.dtype == jnp.bfloat16
    assert jnp.allclose(got2b.astype(jnp.float32), want2, atol=5e-2, rtol=5e-2)

    # 4) Large T: exercises >2 evenly-split tiles (3 x 1368 rows) + partial tile.
    T3 = 4100
    x3 = jax.random.normal(k_huge, (T3, 128), jnp.float32)
    got3 = audio_proj_pallas(x3, model.w1, model.b1, model.w2, model.b2)
    want3 = _audio_proj_xla(x3, model.w1, model.b1, model.w2, model.b2)
    jax.block_until_ready(got3)
    assert got3.shape == (T3, 256)
    assert jnp.allclose(got3, want3, atol=1e-2, rtol=1e-2)

    print("KERNEL_OK")
</pallas_src>

<mosaic_0001>
module attributes {stable_mosaic.version = 11 : i64} {
  func.func @_audio_proj_kernel(%arg0: i32, %arg1: memref<8x128xf32, #tpu.memory_space<vmem>>, %arg2: memref<128x512xbf16, #tpu.memory_space<vmem>>, %arg3: memref<1x512xf32, #tpu.memory_space<vmem>>, %arg4: memref<512x256xbf16, #tpu.memory_space<vmem>>, %arg5: memref<1x256xf32, #tpu.memory_space<vmem>>, %arg6: memref<8x256xf32, #tpu.memory_space<vmem>>) attributes {dimension_semantics = [#tpu.dimension_semantics<parallel>], iteration_bounds = array<i64: 1>, scalar_prefetch = 0 : i64, scratch_operands = 0 : i64, tpu.core_type = #tpu.core_type<tc>, window_params = [{transform_indices = @transform_0, window_bounds = array<i64: 8, 128>}, {pipeline_mode = #tpu.pipeline_mode<synchronous>, transform_indices = @transform_1, window_bounds = array<i64: 128, 512>}, {pipeline_mode = #tpu.pipeline_mode<synchronous>, transform_indices = @transform_2, window_bounds = array<i64: 1, 512>}, {pipeline_mode = #tpu.pipeline_mode<synchronous>, transform_indices = @transform_3, window_bounds = array<i64: 512, 256>}, {pipeline_mode = #tpu.pipeline_mode<synchronous>, transform_indices = @transform_4, window_bounds = array<i64: 1, 256>}, {transform_indices = @transform_5, window_bounds = array<i64: 8, 256>}]} {
    %c0 = arith.constant 0 : index
    %c0_0 = arith.constant 0 : index
    %0 = vector.load %arg1[%c0, %c0_0] : memref<8x128xf32, #tpu.memory_space<vmem>>, vector<8x128xf32>
    %1 = arith.truncf %0 : vector<8x128xf32> to vector<8x128xbf16>
    %c0_1 = arith.constant 0 : index
    %c0_2 = arith.constant 0 : index
    %2 = vector.load %arg2[%c0_1, %c0_2] : memref<128x512xbf16, #tpu.memory_space<vmem>>, vector<128x512xbf16>
    %cst = arith.constant dense<0.000000e+00> : vector<8x512xf32>
    %3 = tpu.matmul %1, %2, %cst {dimension_numbers = #tpu.dot_dimension_numbers<[1], [0], [0], [1], [0, 0, 1, 1], [], []>} : vector<8x128xbf16>, vector<128x512xbf16>, vector<8x512xf32> -> vector<8x512xf32>
    %c0_3 = arith.constant 0 : index
    %c0_4 = arith.constant 0 : index
    %4 = vector.load %arg3[%c0_3, %c0_4] : memref<1x512xf32, #tpu.memory_space<vmem>>, vector<1x512xf32>
    %5 = vector.broadcast %4 : vector<1x512xf32> to vector<8x512xf32>
    %6 = arith.addf %3, %5 : vector<8x512xf32>
    %cst_5 = arith.constant 0.000000e+00 : f32
    %7 = vector.broadcast %cst_5 : f32 to vector<8x512xf32>
    %8 = arith.maximumf %6, %7 : vector<8x512xf32>
    %9 = arith.truncf %8 : vector<8x512xf32> to vector<8x512xbf16>
    %c0_6 = arith.constant 0 : index
    %c0_7 = arith.constant 0 : index
    %10 = vector.load %arg4[%c0_6, %c0_7] : memref<512x256xbf16, #tpu.memory_space<vmem>>, vector<512x256xbf16>
    %cst_8 = arith.constant dense<0.000000e+00> : vector<8x256xf32>
    %11 = tpu.matmul %9, %10, %cst_8 {dimension_numbers = #tpu.dot_dimension_numbers<[1], [0], [0], [1], [0, 0, 1, 1], [], []>} : vector<8x512xbf16>, vector<512x256xbf16>, vector<8x256xf32> -> vector<8x256xf32>
    %c0_9 = arith.constant 0 : index
    %c0_10 = arith.constant 0 : index
    %12 = vector.load %arg5[%c0_9, %c0_10] : memref<1x256xf32, #tpu.memory_space<vmem>>, vector<1x256xf32>
    %13 = vector.broadcast %12 : vector<1x256xf32> to vector<8x256xf32>
    %14 = arith.addf %11, %13 : vector<8x256xf32>
    %c0_11 = arith.constant 0 : index
    %c0_12 = arith.constant 0 : index
    %15 = vector.load %arg6[%c0_11, %c0_12] : memref<8x256xf32, #tpu.memory_space<vmem>>, vector<8x256xf32>
    tpu.vector_store %arg6[%c0_11, %c0_12], %14 {strides = array<i32>} : memref<8x256xf32, #tpu.memory_space<vmem>>, vector<8x256xf32>,
    return
  }
  func.func @transform_0(%arg0: i32) -> (i32, i32) {
    %c0_i32 = arith.constant 0 : i32
    %c0_i32_0 = arith.constant 0 : i32
    return %arg0, %c0_i32 : i32, i32
  }
  func.func @transform_1(%arg0: i32) -> (i32, i32) {
    %c0_i32 = arith.constant 0 : i32
    %c0_i32_0 = arith.constant 0 : i32
    %c0_i32_1 = arith.constant 0 : i32
    return %c0_i32, %c0_i32_0 : i32, i32
  }
  func.func @transform_2(%arg0: i32) -> (i32, i32) {
    %c0_i32 = arith.constant 0 : i32
    %c0_i32_0 = arith.constant 0 : i32
    %c0_i32_1 = arith.constant 0 : i32
    return %c0_i32, %c0_i32_0 : i32, i32
  }
  func.func @transform_3(%arg0: i32) -> (i32, i32) {
    %c0_i32 = arith.constant 0 : i32
    %c0_i32_0 = arith.constant 0 : i32
    %c0_i32_1 = arith.constant 0 : i32
    return %c0_i32, %c0_i32_0 : i32, i32
  }
  func.func @transform_4(%arg0: i32) -> (i32, i32) {
    %c0_i32 = arith.constant 0 : i32
    %c0_i32_0 = arith.constant 0 : i32
    %c0_i32_1 = arith.constant 0 : i32
    return %c0_i32, %c0_i32_0 : i32, i32
  }
  func.func @transform_5(%arg0: i32) -> (i32, i32) {
    %c0_i32 = arith.constant 0 : i32
    %c0_i32_0 = arith.constant 0 : i32
    return %arg0, %c0_i32 : i32, i32
  }
}

</mosaic_0001>

<bundles_post_ra>
// kernel: tpu_custom_call.1
= control target key start
LH: loop header
LB: loop body
LE: loop exit
PB: predicated region body
PF: predicated region fallthrough
CT: control target
= control target key end

     0   :  { %10 = vsyncpa [#allocation3], 0  ;;  %s1303_s0 = inlined_call_operand.hbm [shape: f32[8,128], index: 0, kind: input, shape index: {}]   ;;  %s1304_s1 = inlined_call_operand.hbm [shape: bf16[128,512], index: 1, kind: input, shape index: {}]   ;;  %s1305_s2 = inlined_call_operand.vmem [shape: f32[1,512], index: 2, kind: input, shape index: {}]   ;;  %s1306_s3 = inlined_call_operand.hbm [shape: bf16[512,256], index: 3, kind: input, shape index: {}]   ;;  %s1307_s4 = inlined_call_operand.vmem [shape: f32[1,256], index: 4, kind: input, shape index: {}]   ;;  %s1308_s5 = inlined_call_operand.hbm [shape: f32[8,256], index: 5, kind: output, shape index: {}]  }
   0x1   :  { %11 = vsyncpa [#allocation6], 0 }
   0x2   :  { %12 = vsyncpa [#allocation4], 0  ;;  %s1210_s18 = smov [#allocation5]   ;;  %s1116_s22 = scalar_lea.hbm %s1304_s1, 4096 }
   0x3   :  { %s28_s19 = sshll.u32 %s1210_s18, 4  ;;  %p1117_p0 = scmp.ne.s32.totalorder %s1304_s1, %s1116_s22  ;;  %s29_s19 = int_to_ptr.vmem [resolvable:$true] %s28_s19 }
   0x4   :  { %p1120_p1 = scmp.lt.u32.totalorder %s1116_s22, %s1304_s1 }
   0x6   :  { %p1122_p2 = pnand %p1120_p1, %p1117_p0 }
   0x8   :  { %1125 = shalt.err (!%p1122_p2)
}
   0x9   :  { %s1126_s27 = scalar_lea.vmem %s29_s19, 4096  ;;  %p1131_p4 = scmp.lt.s32.totalorder %s29_s19, %s29_s19 }
   0xa   :  { %p1127_p3 = scmp.ne.s32.totalorder %s29_s19, %s1126_s27  ;;  %p1132_p5 = scmp.lt.s32.totalorder %s1126_s27, %s1126_s27 }
   0xc   :  { %p1133_p6 = por %p1132_p5, %p1131_p4 }
   0xe   :  { %p1134_p7 = pnand %p1133_p6, %p1127_p3 }
  0x10   :  { %1137 = shalt.err (!%p1134_p7)
}
  0x11   :  { %s1211_s28 = smov 256   ;;  %s1212_s29 = smov 16  }
  0x12   :  { %34 = dma.hbm_to_vmem [thread:$0]  %s1304_s1, 4096, %s29_s19, [#allocation6], %s1211_s28, %s1211_s28, %s1212_s29  }
  0x13   :  { %s1213_s7 = smov [#allocation2]   ;;  %s1214_s9 = smov [#allocation7]  }
  0x14   :  { %s19_s8 = sshll.u32 %s1213_s7, 4  ;;  %s42_s10 = sshll.u32 %s1214_s9, 4  ;;  %s20_s8 = int_to_ptr.vmem [resolvable:$true] %s19_s8  ;;  %s43_s10 = int_to_ptr.vmem [resolvable:$true] %s42_s10 }
  0x15   :  { %s1138_s13 = scalar_lea.hbm %s1303_s0, 128 }
  0x16   :  { %p1139_p8 = scmp.ne.s32.totalorder %s1303_s0, %s1138_s13  ;;  %p1142_p9 = scmp.lt.u32.totalorder %s1138_s13, %s1303_s0 }
  0x18   :  { %p1144_p10 = pnand %p1142_p9, %p1139_p8 }
  0x1a   :  { %1147 = shalt.err (!%p1144_p10)
}
  0x1b   :  { %s1148_s1 = scalar_lea.vmem %s20_s8, 128  ;;  %p1153_p12 = scmp.lt.s32.totalorder %s20_s8, %s20_s8 }
  0x1c   :  { %p1149_p11 = scmp.ne.s32.totalorder %s20_s8, %s1148_s1  ;;  %p1154_p13 = scmp.lt.s32.totalorder %s1148_s1, %s1148_s1 }
  0x1e   :  { %p1155_p0 = por %p1154_p13, %p1153_p12 }
  0x20   :  { %p1156_p1 = pnand %p1155_p0, %p1149_p11 }
  0x22   :  { %1159 = shalt.err (!%p1156_p1)
}
  0x23   :  { %22 = dma.hbm_to_vmem [thread:$0]  %s1303_s0, 128, %s20_s8, [#allocation3]  }
  0x24   :  { %s1160_s22 = scalar_lea.hbm %s1306_s3, 8192 }
  0x25   :  { %p1161_p2 = scmp.ne.s32.totalorder %s1306_s3, %s1160_s22  ;;  %p1164_p3 = scmp.lt.u32.totalorder %s1160_s22, %s1306_s3 }
  0x27   :  { %p1166_p4 = pnand %p1164_p3, %p1161_p2 }
  0x29   :  { %1169 = shalt.err (!%p1166_p4)
}
  0x2a   :  { %s1170_s27 = scalar_lea.vmem %s43_s10, 8192  ;;  %p1175_p6 = scmp.lt.s32.totalorder %s43_s10, %s43_s10 }
  0x2b   :  { %p1171_p5 = scmp.ne.s32.totalorder %s43_s10, %s1170_s27  ;;  %p1176_p7 = scmp.lt.s32.totalorder %s1170_s27, %s1170_s27 }
  0x2d   :  { %p1177_p8 = por %p1176_p7, %p1175_p6 }
  0x2f   :  { %p1178_p9 = pnand %p1177_p8, %p1171_p5 }
  0x31   :  { %1181 = shalt.err (!%p1178_p9)
}
  0x32   :  { %s1215_s0 = smov 128   ;;  %s1216_s28 = smov 8  }
  0x33   :  { %48 = dma.hbm_to_vmem [thread:$0]  %s1306_s3, 8192, %s43_s10, [#allocation6], %s1215_s0, %s1215_s0, %s1216_s28  }
  0x34   :  { %1204 = dma.done.wait [#allocation3], 128  }
  0x35   :  { %1205 = vsyncadd [#allocation3], 4294967168 }
  0x36   :  { %1206 = dma.done.wait [#allocation6], 12288  }
  0x37   :  { %1207 = vsyncadd [#allocation6], 4294955008  ;;  %v1217_v0 = vmov 0   ;;  %v972_v1 = vld [vmem:[#allocation5 + $0x4] ss:$16 sps:$4 sm:$0xff]   ;;  %v61_v33 = vld [vmem:[#allocation2] sm:$0xff] }
  0x38   :  { %309 = vmatprep.mubr.bf16.mxu0 %v1217_v0  ;;  %350 = vmatprep.mubr.bf16.mxu1 %v1217_v0  ;;  %v974_v2 = vld [vmem:[#allocation5 + $0xc] ss:$16 sps:$4 sm:$0xff]   ;;  %v976_v3 = vld [vmem:[#allocation5] ss:$16 sps:$4 sm:$0xff]   ;;  %v977_v4 = vld [vmem:[#allocation5 + $0x8] ss:$16 sps:$4 sm:$0xff]   ;;  %v62_v36 = vpack.c.bf16 %v61_v33, %v61_v33 }
  0x39   :  { %277 = vmatprep.subr.bf16.mxu0 %v972_v1  ;;  %318 = vmatprep.subr.bf16.mxu1 %v974_v2  ;;  %v978_v5 = vld [vmem:[#allocation5 + $0x24] ss:$16 sps:$4 sm:$0xff]   ;;  %v980_v6 = vld [vmem:[#allocation5 + $0x2c] ss:$16 sps:$4 sm:$0xff]   ;;  %v982_v7 = vld [vmem:[#allocation5 + $0x20] ss:$16 sps:$4 sm:$0xff]  }
  0x3a   :  { %278 = vmatpush1.bf16.msra.mxu0 %v976_v3  ;;  %319 = vmatpush1.bf16.msra.mxu1 %v977_v4  ;;  %v983_v8 = vld [vmem:[#allocation5 + $0x28] ss:$16 sps:$4 sm:$0xff]   ;;  %v984_v9 = vld [vmem:[#allocation5 + $0x44] ss:$16 sps:$4 sm:$0xff]   ;;  %v986_v10 = vld [vmem:[#allocation5 + $0x4c] ss:$16 sps:$4 sm:$0xff]  }
  0x3b   :  { %279 = vmatprep.subr.bf16.mxu0 %v978_v5  ;;  %320 = vmatprep.subr.bf16.mxu1 %v980_v6  ;;  %v988_v11 = vld [vmem:[#allocation5 + $0x40] ss:$16 sps:$4 sm:$0xff]   ;;  %v989_v12 = vld [vmem:[#allocation5 + $0x48] ss:$16 sps:$4 sm:$0xff]   ;;  %v990_v13 = vld [vmem:[#allocation5 + $0x64] ss:$16 sps:$4 sm:$0xff]  }
  0x3c   :  { %v992_v14 = vld [vmem:[#allocation5 + $0x6c] ss:$16 sps:$4 sm:$0xff]   ;;  %v994_v15 = vld [vmem:[#allocation5 + $0x60] ss:$16 sps:$4 sm:$0xff]   ;;  %v995_v16 = vld [vmem:[#allocation5 + $0x68] ss:$16 sps:$4 sm:$0xff]  }
  0x3d   :  { %v996_v17 = vld [vmem:[#allocation5 + $0x84] ss:$16 sps:$4 sm:$0xff]   ;;  %v998_v18 = vld [vmem:[#allocation5 + $0x8c] ss:$16 sps:$4 sm:$0xff]   ;;  %v1000_v19 = vld [vmem:[#allocation5 + $0x80] ss:$16 sps:$4 sm:$0xff]  }
  0x3e   :  { %280 = vmatpush1.bf16.msra.mxu0 %v982_v7  ;;  %321 = vmatpush1.bf16.msra.mxu1 %v983_v8  ;;  %v1001_v20 = vld [vmem:[#allocation5 + $0x88] ss:$16 sps:$4 sm:$0xff]   ;;  %v1002_v21 = vld [vmem:[#allocation5 + $0xa4] ss:$16 sps:$4 sm:$0xff]   ;;  %v1004_v22 = vld [vmem:[#allocation5 + $0xac] ss:$16 sps:$4 sm:$0xff]  }
  0x3f   :  { %281 = vmatprep.subr.bf16.mxu0 %v984_v9  ;;  %322 = vmatprep.subr.bf16.mxu1 %v986_v10  ;;  %v1006_v23 = vld [vmem:[#allocation5 + $0xa0] ss:$16 sps:$4 sm:$0xff]   ;;  %v1007_v24 = vld [vmem:[#allocation5 + $0xa8] ss:$16 sps:$4 sm:$0xff]   ;;  %v1008_v25 = vld [vmem:[#allocation5 + $0xc4] ss:$16 sps:$4 sm:$0xff]  }
  0x40   :  { %v1010_v26 = vld [vmem:[#allocation5 + $0xcc] ss:$16 sps:$4 sm:$0xff]   ;;  %v1012_v27 = vld [vmem:[#allocation5 + $0xc0] ss:$16 sps:$4 sm:$0xff]   ;;  %v1013_v28 = vld [vmem:[#allocation5 + $0xc8] ss:$16 sps:$4 sm:$0xff]  }
  0x41   :  { %v1014_v29 = vld [vmem:[#allocation5 + $0xe4] ss:$16 sps:$4 sm:$0xff]   ;;  %v1016_v30 = vld [vmem:[#allocation5 + $0xec] ss:$16 sps:$4 sm:$0xff]   ;;  %v1018_v31 = vld [vmem:[#allocation5 + $0xe0] ss:$16 sps:$4 sm:$0xff]  }
  0x42   :  { %282 = vmatpush1.bf16.msra.mxu0 %v988_v11  ;;  %323 = vmatpush1.bf16.msra.mxu1 %v989_v12  ;;  %v1019_v32 = vld [vmem:[#allocation5 + $0xe8] ss:$16 sps:$4 sm:$0xff]   ;;  %v1022_v34 = vld [vmem:[#allocation7 + $0x4] ss:$8 sps:$4 sm:$0xff]   ;;  %v1028_v39 = vld [vmem:[#allocation7 + $0x14] ss:$8 sps:$4 sm:$0xff]  }
  0x43   :  { %283 = vmatprep.subr.bf16.mxu0 %v990_v13  ;;  %324 = vmatprep.subr.bf16.mxu1 %v992_v14  ;;  %v1025_v35 = vld [vmem:[#allocation7 + $0x104] ss:$8 sps:$4 sm:$0xff]   ;;  %v1020_v37 = vld [vmem:[#allocation7] ss:$8 sps:$4 sm:$0xff]   ;;  %v1031_v40 = vld [vmem:[#allocation7 + $0x114] ss:$8 sps:$4 sm:$0xff]  }
  0x44   :  { %v1023_v38 = vld [vmem:[#allocation7 + $0x100] ss:$8 sps:$4 sm:$0xff]   ;;  %v1026_v41 = vld [vmem:[#allocation7 + $0x10] ss:$8 sps:$4 sm:$0xff]   ;;  %v1034_v43 = vld [vmem:[#allocation7 + $0x24] ss:$8 sps:$4 sm:$0xff]  }
  0x45   :  { %v1029_v42 = vld [vmem:[#allocation7 + $0x110] ss:$8 sps:$4 sm:$0xff]   ;;  %v1037_v44 = vld [vmem:[#allocation7 + $0x124] ss:$8 sps:$4 sm:$0xff]   ;;  %v1032_v45 = vld [vmem:[#allocation7 + $0x20] ss:$8 sps:$4 sm:$0xff]  }
  0x46   :  { %284 = vmatpush1.bf16.msra.mxu0 %v994_v15  ;;  %325 = vmatpush1.bf16.msra.mxu1 %v995_v16  ;;  %v1035_v46 = vld [vmem:[#allocation7 + $0x120] ss:$8 sps:$4 sm:$0xff]   ;;  %v1040_v47 = vld [vmem:[#allocation7 + $0x34] ss:$8 sps:$4 sm:$0xff]   ;;  %v1038_v49 = vld [vmem:[#allocation7 + $0x30] ss:$8 sps:$4 sm:$0xff]  }
  0x47   :  { %285 = vmatprep.subr.bf16.mxu0 %v996_v17  ;;  %326 = vmatprep.subr.bf16.mxu1 %v998_v18  ;;  %v1043_v48 = vld [vmem:[#allocation7 + $0x134] ss:$8 sps:$4 sm:$0xff]   ;;  %v1041_v50 = vld [vmem:[#allocation7 + $0x130] ss:$8 sps:$4 sm:$0xff]   ;;  %v1046_v51 = vld [vmem:[#allocation7 + $0x44] ss:$8 sps:$4 sm:$0xff]  }
  0x48   :  { %v1049_v52 = vld [vmem:[#allocation7 + $0x144] ss:$8 sps:$4 sm:$0xff]   ;;  %v1044_v53 = vld [vmem:[#allocation7 + $0x40] ss:$8 sps:$4 sm:$0xff]   ;;  %v1052_v55 = vld [vmem:[#allocation7 + $0x54] ss:$8 sps:$4 sm:$0xff]  }
  0x49   :  { %v1047_v54 = vld [vmem:[#allocation7 + $0x140] ss:$8 sps:$4 sm:$0xff]   ;;  %v1055_v56 = vld [vmem:[#allocation7 + $0x154] ss:$8 sps:$4 sm:$0xff]   ;;  %v1050_v57 = vld [vmem:[#allocation7 + $0x50] ss:$8 sps:$4 sm:$0xff]  }
  0x4a   :  { %286 = vmatpush1.bf16.msra.mxu0 %v1000_v19  ;;  %327 = vmatpush1.bf16.msra.mxu1 %v1001_v20  ;;  %v1053_v58 = vld [vmem:[#allocation7 + $0x150] ss:$8 sps:$4 sm:$0xff]   ;;  %v1058_v59 = vld [vmem:[#allocation7 + $0x64] ss:$8 sps:$4 sm:$0xff]   ;;  %v1056_v61 = vld [vmem:[#allocation7 + $0x60] ss:$8 sps:$4 sm:$0xff]  }
  0x4b   :  { %287 = vmatprep.subr.bf16.mxu0 %v1002_v21  ;;  %328 = vmatprep.subr.bf16.mxu1 %v1004_v22  ;;  %v1061_v60 = vld [vmem:[#allocation7 + $0x164] ss:$8 sps:$4 sm:$0xff]   ;;  %v1059_v62 = vld [vmem:[#allocation7 + $0x160] ss:$8 sps:$4 sm:$0xff]   ;;  %v1064_v63 = vld [vmem:[#allocation7 + $0x74] ss:$8 sps:$4 sm:$0xff]  }
  0x4c   :  { %v1067_v0 = vld [vmem:[#allocation7 + $0x174] ss:$8 sps:$4 sm:$0xff]   ;;  %v1062_v1 = vld [vmem:[#allocation7 + $0x70] ss:$8 sps:$4 sm:$0xff]   ;;  %v1070_v3 = vld [vmem:[#allocation7 + $0x84] ss:$8 sps:$4 sm:$0xff]  }
  0x4d   :  { %v1065_v2 = vld [vmem:[#allocation7 + $0x170] ss:$8 sps:$4 sm:$0xff]   ;;  %v1073_v4 = vld [vmem:[#allocation7 + $0x184] ss:$8 sps:$4 sm:$0xff]   ;;  %v1068_v5 = vld [vmem:[#allocation7 + $0x80] ss:$8 sps:$4 sm:$0xff]  }
  0x4e   :  { %288 = vmatpush1.bf16.msra.mxu0 %v1006_v23  ;;  %329 = vmatpush1.bf16.msra.mxu1 %v1007_v24  ;;  %v1071_v6 = vld [vmem:[#allocation7 + $0x180] ss:$8 sps:$4 sm:$0xff]   ;;  %v1076_v7 = vld [vmem:[#allocation7 + $0x94] ss:$8 sps:$4 sm:$0xff]   ;;  %v1074_v9 = vld [vmem:[#allocation7 + $0x90] ss:$8 sps:$4 sm:$0xff]  }
  0x4f   :  { %289 = vmatprep.subr.bf16.mxu0 %v1008_v25  ;;  %330 = vmatprep.subr.bf16.mxu1 %v1010_v26  ;;  %v1079_v8 = vld [vmem:[#allocation7 + $0x194] ss:$8 sps:$4 sm:$0xff]   ;;  %v1077_v10 = vld [vmem:[#allocation7 + $0x190] ss:$8 sps:$4 sm:$0xff]   ;;  %v1082_v11 = vld [vmem:[#allocation7 + $0xa4] ss:$8 sps:$4 sm:$0xff]  }
  0x50   :  { %v1085_v12 = vld [vmem:[#allocation7 + $0x1a4] ss:$8 sps:$4 sm:$0xff]   ;;  %v1080_v13 = vld [vmem:[#allocation7 + $0xa0] ss:$8 sps:$4 sm:$0xff]   ;;  %v1088_v15 = vld [vmem:[#allocation7 + $0xb4] ss:$8 sps:$4 sm:$0xff]  }
  0x51   :  { %v1083_v14 = vld [vmem:[#allocation7 + $0x1a0] ss:$8 sps:$4 sm:$0xff]   ;;  %v1091_v16 = vld [vmem:[#allocation7 + $0x1b4] ss:$8 sps:$4 sm:$0xff]   ;;  %v1086_v17 = vld [vmem:[#allocation7 + $0xb0] ss:$8 sps:$4 sm:$0xff]  }
  0x52   :  { %290 = vmatpush1.bf16.msra.mxu0 %v1012_v27  ;;  %331 = vmatpush1.bf16.msra.mxu1 %v1013_v28  ;;  %v1089_v18 = vld [vmem:[#allocation7 + $0x1b0] ss:$8 sps:$4 sm:$0xff]   ;;  %v1094_v19 = vld [vmem:[#allocation7 + $0xc4] ss:$8 sps:$4 sm:$0xff]   ;;  %v1092_v21 = vld [vmem:[#allocation7 + $0xc0] ss:$8 sps:$4 sm:$0xff]  }
  0x53   :  { %291 = vmatprep.subr.bf16.mxu0 %v1014_v29  ;;  %332 = vmatprep.subr.bf16.mxu1 %v1016_v30  ;;  %v1097_v20 = vld [vmem:[#allocation7 + $0x1c4] ss:$8 sps:$4 sm:$0xff]   ;;  %v1095_v22 = vld [vmem:[#allocation7 + $0x1c0] ss:$8 sps:$4 sm:$0xff]   ;;  %v1100_v23 = vld [vmem:[#allocation7 + $0xd4] ss:$8 sps:$4 sm:$0xff]  }
  0x54   :  { %v1103_v24 = vld [vmem:[#allocation7 + $0x1d4] ss:$8 sps:$4 sm:$0xff]   ;;  %v1098_v25 = vld [vmem:[#allocation7 + $0xd0] ss:$8 sps:$4 sm:$0xff]   ;;  %v1106_v27 = vld [vmem:[#allocation7 + $0xe4] ss:$8 sps:$4 sm:$0xff]  }
  0x55   :  { %v1101_v26 = vld [vmem:[#allocation7 + $0x1d0] ss:$8 sps:$4 sm:$0xff]   ;;  %v1109_v28 = vld [vmem:[#allocation7 + $0x1e4] ss:$8 sps:$4 sm:$0xff]   ;;  %v1104_v29 = vld [vmem:[#allocation7 + $0xe0] ss:$8 sps:$4 sm:$0xff]  }
  0x56   :  { %292 = vmatpush1.bf16.msra.mxu0 %v1018_v31  ;;  %333 = vmatpush1.bf16.msra.mxu1 %v1019_v32  ;;  %v1107_v30 = vld [vmem:[#allocation7 + $0x1e0] ss:$8 sps:$4 sm:$0xff]   ;;  %v1112_v31 = vld [vmem:[#allocation7 + $0xf4] ss:$8 sps:$4 sm:$0xff]   ;;  %v1110_v33 = vld [vmem:[#allocation7 + $0xf0] ss:$8 sps:$4 sm:$0xff]  }
  0x57   :  { %763 = vmatprep.subr.bf16.mxu1 %v1022_v34  ;;  %804 = vmatprep.subr.bf16.mxu0 %v1025_v35  ;;  %v1115_v32 = vld [vmem:[#allocation7 + $0x1f4] ss:$8 sps:$4 sm:$0xff]   ;;  %v1113_v34 = vld [vmem:[#allocation7 + $0x1f0] ss:$8 sps:$4 sm:$0xff]   ;;  %v97_v35 = vlaneseq  ;;  %s1218_s8 = smov [#allocation8]  }
  0x58   :  { %s853_s9 = sshll.u32 %s1218_s8, 4  ;;  %s854_s9 = int_to_ptr.vmem [resolvable:$true] %s853_s9 }
  0x59   :  { %310 = vmatmul.mubr.bf16.vlgmr.msra.gmra.mrb[0].mxu0 %v62_v36  ;;  %351 = vmatmul.mubr.bf16.vlgmr.msra.gmra.mrb[0].mxu1 %v62_v36  ;;  %v98_v36 = vshrl.u32 %v97_v35, 7  ;;  %p1187_p11 = scmp.lt.s32.totalorder %s854_s9, %s854_s9 }
  0x5a   :  { %764 = vmatpush1.bf16.msra.mxu1 %v1020_v37  ;;  %805 = vmatpush1.bf16.msra.mxu0 %v1023_v38 }
  0x5b   :  { %765 = vmatprep.subr.bf16.mxu1 %v1028_v39  ;;  %806 = vmatprep.subr.bf16.mxu0 %v1031_v40  ;;  %v99_v37 = vsub.s32 0, %v98_v36  ;;  %v107_v38 = vsub.s32 2, %v98_v36  ;;  %v95_v39 = vld [vmem:[%s1305_s2] sm:$0xf]  ;;  %v103_v40 = vsub.s32 1, %v98_v36 }
  0x5e   :  { %766 = vmatpush1.bf16.msra.mxu1 %v1026_v41  ;;  %807 = vmatpush1.bf16.msra.mxu0 %v1029_v42  ;;  %v111_v41 = vsub.s32 3, %v98_v36  ;;  %v100_v42 = vrot.slane %v95_v39, %v99_v37 }
  0x5f   :  { %767 = vmatprep.subr.bf16.mxu1 %v1034_v43  ;;  %808 = vmatprep.subr.bf16.mxu0 %v1037_v44  ;;  %v108_v43 = vrot.slane %v95_v39, %v107_v38  ;;  %v104_v44 = vrot.slane %v95_v39, %v103_v40 }
  0x62   :  { %768 = vmatpush1.bf16.msra.mxu1 %v1032_v45  ;;  %809 = vmatpush1.bf16.msra.mxu0 %v1035_v46  ;;  %v112_v45 = vrot.slane %v95_v39, %v111_v41 }
  0x63   :  { %769 = vmatprep.subr.bf16.mxu1 %v1040_v47  ;;  %810 = vmatprep.subr.bf16.mxu0 %v1043_v48 }
  0x66   :  { %770 = vmatpush1.bf16.msra.mxu1 %v1038_v49  ;;  %811 = vmatpush1.bf16.msra.mxu0 %v1041_v50 }
  0x67   :  { %771 = vmatprep.subr.bf16.mxu1 %v1046_v51  ;;  %812 = vmatprep.subr.bf16.mxu0 %v1049_v52 }
  0x6a   :  { %772 = vmatpush1.bf16.msra.mxu1 %v1044_v53  ;;  %813 = vmatpush1.bf16.msra.mxu0 %v1047_v54 }
  0x6b   :  { %773 = vmatprep.subr.bf16.mxu1 %v1052_v55  ;;  %814 = vmatprep.subr.bf16.mxu0 %v1055_v56 }
  0x6e   :  { %774 = vmatpush1.bf16.msra.mxu1 %v1050_v57  ;;  %815 = vmatpush1.bf16.msra.mxu0 %v1053_v58 }
  0x6f   :  { %775 = vmatprep.subr.bf16.mxu1 %v1058_v59  ;;  %816 = vmatprep.subr.bf16.mxu0 %v1061_v60 }
  0x72   :  { %776 = vmatpush1.bf16.msra.mxu1 %v1056_v61  ;;  %817 = vmatpush1.bf16.msra.mxu0 %v1059_v62 }
  0x73   :  { %777 = vmatprep.subr.bf16.mxu1 %v1064_v63  ;;  %818 = vmatprep.subr.bf16.mxu0 %v1067_v0 }
  0x76   :  { %778 = vmatpush1.bf16.msra.mxu1 %v1062_v1  ;;  %819 = vmatpush1.bf16.msra.mxu0 %v1065_v2  ;;  %v431_v2 = vld [vmem:[%s1307_s4] sm:$0x3]  ;;  %s1182_s4 = scalar_lea.vmem %s854_s9, 256 }
  0x77   :  { %779 = vmatprep.subr.bf16.mxu1 %v1070_v3  ;;  %820 = vmatprep.subr.bf16.mxu0 %v1073_v4  ;;  %v436_v3 = vrot.slane %v431_v2, %v99_v37  ;;  %v440_v4 = vrot.slane %v431_v2, %v103_v40  ;;  %p1183_p10 = scmp.ne.s32.totalorder %s854_s9, %s1182_s4  ;;  %p1188_p12 = scmp.lt.s32.totalorder %s1182_s4, %s1182_s4 }
  0x79   :  { %p1189_p13 = por %p1188_p12, %p1187_p11 }
  0x7a   :  { %780 = vmatpush1.bf16.msra.mxu1 %v1068_v5  ;;  %821 = vmatpush1.bf16.msra.mxu0 %v1071_v6 }
  0x7b   :  { %781 = vmatprep.subr.bf16.mxu1 %v1076_v7  ;;  %822 = vmatprep.subr.bf16.mxu0 %v1079_v8  ;;  %p1190_p0 = pnand %p1189_p13, %p1183_p10 }
  0x7e   :  { %782 = vmatpush1.bf16.msra.mxu1 %v1074_v9  ;;  %823 = vmatpush1.bf16.msra.mxu0 %v1077_v10 }
  0x7f   :  { %783 = vmatprep.subr.bf16.mxu1 %v1082_v11  ;;  %824 = vmatprep.subr.bf16.mxu0 %v1085_v12 }
  0x82   :  { %784 = vmatpush1.bf16.msra.mxu1 %v1080_v13  ;;  %825 = vmatpush1.bf16.msra.mxu0 %v1083_v14 }
  0x83   :  { %785 = vmatprep.subr.bf16.mxu1 %v1088_v15  ;;  %826 = vmatprep.subr.bf16.mxu0 %v1091_v16 }
  0x86   :  { %786 = vmatpush1.bf16.msra.mxu1 %v1086_v17  ;;  %827 = vmatpush1.bf16.msra.mxu0 %v1089_v18 }
  0x87   :  { %787 = vmatprep.subr.bf16.mxu1 %v1094_v19  ;;  %828 = vmatprep.subr.bf16.mxu0 %v1097_v20 }
  0x8a   :  { %788 = vmatpush1.bf16.msra.mxu1 %v1092_v21  ;;  %829 = vmatpush1.bf16.msra.mxu0 %v1095_v22 }
  0x8b   :  { %789 = vmatprep.subr.bf16.mxu1 %v1100_v23  ;;  %830 = vmatprep.subr.bf16.mxu0 %v1103_v24 }
  0x8e   :  { %790 = vmatpush1.bf16.msra.mxu1 %v1098_v25  ;;  %831 = vmatpush1.bf16.msra.mxu0 %v1101_v26 }
  0x8f   :  { %791 = vmatprep.subr.bf16.mxu1 %v1106_v27  ;;  %832 = vmatprep.subr.bf16.mxu0 %v1109_v28 }
  0x92   :  { %792 = vmatpush1.bf16.msra.mxu1 %v1104_v29  ;;  %833 = vmatpush1.bf16.msra.mxu0 %v1107_v30 }
  0x93   :  { %793 = vmatprep.subr.bf16.mxu1 %v1112_v31  ;;  %834 = vmatprep.subr.bf16.mxu0 %v1115_v32 }
  0x96   :  { %794 = vmatpush1.bf16.msra.mxu1 %v1110_v33  ;;  %835 = vmatpush1.bf16.msra.mxu0 %v1113_v34 }
 0x12c   :  { %v311_v46 = vpop.f32.mrb[0].mxu0  ;;  %v352_v47 = vpop.f32.mrb[0].mxu1 }
 0x12d   :  { %v312_v48 = vadd.f32 %v311_v46, %v100_v42  ;;  %v353_v49 = vadd.f32 %v352_v47, %v108_v43  ;;  %v313_v50 = vpop.f32.mrb[1].mxu0  ;;  %v354_v51 = vpop.f32.mrb[1].mxu1 }
 0x12e   :  { %v314_v52 = vadd.f32 %v313_v50, %v104_v44  ;;  %v355_v53 = vadd.f32 %v354_v51, %v112_v45  ;;  %v315_v54 = vpop.f32.mrb[2].mxu0  ;;  %v356_v55 = vpop.f32.mrb[2].mxu1 }
 0x12f   :  { %v359_v56 = vmax.f32 %v312_v48, 0.0  ;;  %v361_v57 = vmax.f32 %v353_v49, 0.0  ;;  %v316_v58 = vpop.f32.mrb[3].mxu0  ;;  %v357_v59 = vpop.f32.mrb[3].mxu1 }
 0x130   :  { %v360_v60 = vmax.f32 %v314_v52, 0.0  ;;  %v362_v61 = vmax.f32 %v355_v53, 0.0 }
 0x131   :  { %v365_v62 = vpack.c.bf16 %v361_v57, %v361_v57  ;;  %v363_v1 = vpack.c.bf16 %v359_v56, %v359_v56 }
 0x132   :  { %v364_v63 = vpack.c.bf16 %v360_v60, %v360_v60  ;;  %v366_v0 = vpack.c.bf16 %v362_v61, %v362_v61 }
 0x134   :  { %795 = vmatprep.mubr.bf16.mxu1 %v364_v63  ;;  %836 = vmatprep.mubr.bf16.mxu0 %v366_v0 }
 0x135   :  { %796 = vmatmul.mubr.bf16.vlgmr.msra.gmra.mrb[4].mxu1 %v363_v1  ;;  %837 = vmatmul.mubr.bf16.vlgmr.msra.gmra.mrb[4].mxu0 %v365_v62 }
 0x208   :  { %v797_v5 = vpop.f32.mrb[4].mxu1  ;;  %v838_v6 = vpop.f32.mrb[4].mxu0 }
 0x209   :  { %v798_v7 = vadd.f32 %v797_v5, %v436_v3  ;;  %v799_v8 = vpop.f32.mrb[5].mxu1  ;;  %v840_v9 = vpop.f32.mrb[5].mxu0 }
 0x20a   :  { %v800_v10 = vadd.f32 %v799_v8, %v440_v4  ;;  %v801_v11 = vpop.f32.mrb[6].mxu1  ;;  %v842_v12 = vpop.f32.mrb[6].mxu0 }
 0x20b   :  { %v839_v13 = vadd.f32 %v838_v6, %v798_v7  ;;  %v802_v14 = vpop.f32.mrb[7].mxu1  ;;  %v843_v15 = vpop.f32.mrb[7].mxu0 }
 0x20c   :  { %v841_v16 = vadd.f32 %v840_v9, %v800_v10 }
 0x20d   :  { %845 = vst [vmem:[#allocation8] sm:$0xff] %v839_v13 }
 0x20e   :  { %846 = vst [vmem:[#allocation8 + $0x8] sm:$0xff] %v841_v16 }
 0x20f   :  { %1193 = shalt.err (!%p1190_p0)
}
 0x210   :  { %s1194_s12 = scalar_lea.hbm %s1308_s5, 256 }
 0x211   :  { %p1195_p1 = scmp.ne.s32.totalorder %s1308_s5, %s1194_s12  ;;  %p1198_p2 = scmp.lt.u32.totalorder %s1194_s12, %s1308_s5 }
 0x213   :  { %p1200_p3 = pnand %p1198_p2, %p1195_p1 }
 0x215   :  { %1203 = shalt.err (!%p1200_p3)
}
 0x216   :  { %856 = dma.vmem_to_hbm [thread:$0]  %s854_s9, 256, %s1308_s5, [#allocation4]  }
 0x217   :  { %1208 = dma.done.wait [#allocation4], 256  }
 0x218   :  { %1209 = vsyncadd [#allocation4], 4294967040 }
 0x219   :  { %860 = vsyncpa [#allocation3], 1 }
 0x21a   :  { %861 = vsyncpa [#allocation6], 1 }
 0x21b   :  { %862 = vsyncpa [#allocation4], 1 }

</bundles_post_ra>
